<compile_context>
chip_gen: v7x
topology: tpu7x:2x2x1
jax: 0.10.0
libtpu: 0.0.40
codegen_flags: <defaults>
</compile_context>

<pallas_src>
import functools

import jax
import jax.numpy as jnp
from jax.experimental import pallas as pl
from jax.experimental.pallas import tpu as pltpu


def _round_up(x: int, m: int) -> int:
    return ((x + m - 1) // m) * m


def _num_tensorcores() -> int:
    """Best-effort TensorCore-per-chip detection (v7x = 2, v5e/v6e = 1)."""
    try:
        kind = jax.devices()[0].device_kind.lower()
        if "v7" in kind or "7x" in kind:
            return 2
    except Exception:
        pass
    return 1


def _ghat_kernel(f_ref, w_ref, b_ref, o_ref):
    # f_ref: (tm, Kp)  packed feature tile (compute dtype)
    # w_ref: (Kp, Dp)  block-diagonal, linesearch-folded ridge weights (resident)
    # b_ref: (1,  Dp)  tiled, linesearch-folded ridge intercept, f32 (resident)
    # o_ref: (tm, Dp)  lane-dense output tile
    acc = jnp.dot(f_ref[...], w_ref[...], preferred_element_type=jnp.float32)
    o_ref[...] = (acc + b_ref[...]).astype(o_ref.dtype)


def prepare_ghat_params(W, b, linesearch, *, compute_dtype=jnp.bfloat16):
    """Fold the fit-time linesearch scalar into the ridge parameters and build
    the lane-dense block-diagonal weight.  Call once per fitted model and
    cache the result (pass via `params=` to the forward)."""
    p, D = W.shape
    pack = 128 // D if (D < 128 and 128 % D == 0) else 1
    s = jnp.float32(linesearch)
    Wf = s * W.astype(jnp.float32)
    bf = s * b.astype(jnp.float32)
    # Note: on the bf16 path the scalar is folded before the bf16 cast, so
    # rounding differs very slightly from PyTorch's scale-after-matmul order.
    W_blk = jnp.kron(jnp.eye(pack, dtype=jnp.float32), Wf).astype(compute_dtype)
    b_tiled = jnp.tile(bf, pack).reshape(1, pack * D)
    return pack, W_blk, b_tiled


def _pick_tile(M: int, target: int, row_align: int, ncores: int) -> int:
    """Row-tile (packed rows) selection.  One full block for small batches on
    single-TC chips; >= ncores balanced steps on multi-TC chips; `target`
    otherwise (partial last block handled by cdiv grid)."""
    if M <= target and (ncores <= 1 or M <= row_align * ncores):
        return M  # single full-array block (full-dim exception to (8,128) rule)
    if ncores > 1:
        per_core = _round_up(-(-M // ncores), row_align)
        tm = min(target, per_core)
    else:
        tm = target
    tm = max(row_align, (tm // row_align) * row_align)
    return min(tm, M)


def ghat_gradient_layer_forward(F, W, b, linesearch, *,
                                compute_dtype=jnp.bfloat16,
                                out_dtype=jnp.float32,
                                target_tile_rows_packed=None,
                                params=None):
    """out = linesearch * (F @ W + b)

    F: (N, p) float32;  W: (p, D) float32;  b: (D,) float32
    linesearch: python float (fit-time constant, folded into W/b)
    compute_dtype: dtype of the F DMA / MXU inputs (accumulation is f32).
    out_dtype: output dtype (f32 default; bf16 halves write traffic).
    params: optional cached result of prepare_ghat_params (must match
            compute_dtype); avoids rebuilding kron weights per call.
    """
    N, p = F.shape
    p2, D = W.shape
    assert p == p2

    if params is None:
        params = prepare_ghat_params(W, b, linesearch, compute_dtype=compute_dtype)
    pack, W_blk, b_tiled = params
    Kp = pack * p            # packed feature width (256 for p=64, D=32)
    Dp = pack * D            # packed output width  (128 for D=32 -> lane dense)

    ncores = _num_tensorcores()
    if target_tile_rows_packed is None:
        # 2048 packed rows on 2-TC v7x, 1024 elsewhere: ~1-4 MiB DMA per step,
        # well past the point where the ~0.35us step overhead matters, and
        # under every generation's default scoped-VMEM limit (f32 worst case
        # at tm=2048 is ~7 MiB double-buffered).
        target_tile_rows_packed = 2048 if ncores > 1 else 1024

    # sublane alignment of the F tile: 8 rows per vreg at 32-bit, 16 at bf16.
    itemsize = jnp.dtype(compute_dtype).itemsize
    row_align = 8 * max(1, 4 // itemsize)

    # Pad only to a multiple of `pack` (<= pack-1 rows); partial last tile is
    # handled by the cdiv grid, so no padding to a multiple of tm.
    N1 = _round_up(N, pack)
    M = N1 // pack
    Fp = F.astype(compute_dtype)
    if N1 != N:
        Fp = jnp.pad(Fp, ((0, N1 - N), (0, 0)))
    Fp = Fp.reshape(M, Kp)   # row-major: free metadata reshape

    tm = _pick_tile(M, target_tile_rows_packed, row_align, ncores)
    grid = (pl.cdiv(M, tm),)

    out_packed = pl.pallas_call(
        _ghat_kernel,
        out_shape=jax.ShapeDtypeStruct((M, Dp), out_dtype),
        grid_spec=pltpu.PrefetchScalarGridSpec(
            num_scalar_prefetch=0,
            grid=grid,
            in_specs=[
                pl.BlockSpec((tm, Kp), lambda i: (i, 0)),   # packed F row tile
                pl.BlockSpec((Kp, Dp), lambda i: (0, 0)),   # weights, resident
                pl.BlockSpec((1, Dp), lambda i: (0, 0)),    # bias, resident
            ],
            out_specs=pl.BlockSpec((tm, Dp), lambda i: (i, 0)),
        ),
        compiler_params=pltpu.CompilerParams(
            dimension_semantics=("parallel",),
            # let the astype/pad/reshape of F fuse into the input DMA under jit
            allow_input_fusion=[True, False, False],
        ),
    )(Fp, W_blk, b_tiled)

    out = out_packed.reshape(N1, D)
    return out[:N] if N1 != N else out


if __name__ == "__main__":
    # Module hyperparams (synthetic fitted state): hidden_dim=32, p=64.
    hidden_dim = 32          # D: ridge output width
    n_features = 64          # p: random-feature dim of F

    key = jax.random.PRNGKey(0)
    kF, kW, kb, kF2, kF3 = jax.random.split(key, 5)

    W = jax.random.normal(kW, (n_features, hidden_dim), dtype=jnp.float32) * 0.1
    b = jax.random.normal(kb, (hidden_dim,), dtype=jnp.float32) * 0.01
    linesearch = 0.75        # would be set by line_search_cross_entropy at fit time

    F_small = jax.random.normal(kF, (16, n_features), dtype=jnp.float32)
    F_mid = jax.random.normal(kF2, (200, n_features), dtype=jnp.float32)
    F_ragged = jax.random.normal(kF3, (203, n_features), dtype=jnp.float32)  # N % pack != 0

    for F in (F_small, F_mid, F_ragged):
        ref = linesearch * (F @ W + b)

        out_f32 = jax.block_until_ready(
            ghat_gradient_layer_forward(F, W, b, linesearch,
                                        compute_dtype=jnp.float32))
        assert out_f32.shape == ref.shape
        assert jnp.allclose(out_f32, ref, atol=1e-3, rtol=1e-3)

        out_bf16 = jax.block_until_ready(
            ghat_gradient_layer_forward(F, W, b, linesearch,
                                        compute_dtype=jnp.bfloat16))
        assert out_bf16.shape == ref.shape
        assert jnp.allclose(out_bf16, ref, atol=3e-2, rtol=3e-2)

    # Multi-step grid with a masked partial last block (tiny tile on purpose).
    ref = linesearch * (F_mid @ W + b)
    out_part = jax.block_until_ready(
        ghat_gradient_layer_forward(F_mid, W, b, linesearch,
                                    compute_dtype=jnp.float32,
                                    target_tile_rows_packed=16))
    assert jnp.allclose(out_part, ref, atol=1e-3, rtol=1e-3)

    # Jitted path with cached (pre-folded) params and bf16 output — this is
    # the deployment shape where input fusion removes the extra F pass.
    params = prepare_ghat_params(W, b, linesearch, compute_dtype=jnp.bfloat16)
    fwd = jax.jit(functools.partial(
        ghat_gradient_layer_forward, W=W, b=b, linesearch=linesearch,
        compute_dtype=jnp.bfloat16, out_dtype=jnp.bfloat16, params=params))
    out_jit = jax.block_until_ready(fwd(F_ragged))
    ref = linesearch * (F_ragged @ W + b)
    assert out_jit.shape == ref.shape
    assert jnp.allclose(out_jit.astype(jnp.float32), ref, atol=5e-2, rtol=5e-2)

    print("KERNEL_OK")
</pallas_src>

<mosaic_0001>
module attributes {stable_mosaic.version = 11 : i64} {
  func.func @_ghat_kernel(%arg0: i32, %arg1: memref<4x256xf32, #tpu.memory_space<vmem>>, %arg2: memref<256x128xf32, #tpu.memory_space<vmem>>, %arg3: memref<1x128xf32, #tpu.memory_space<vmem>>, %arg4: memref<4x128xf32, #tpu.memory_space<vmem>>) attributes {dimension_semantics = [#tpu.dimension_semantics<parallel>], iteration_bounds = array<i64: 1>, scalar_prefetch = 0 : i64, scratch_operands = 0 : i64, tpu.core_type = #tpu.core_type<tc>, window_params = [{transform_indices = @transform_0, window_bounds = array<i64: 4, 256>}, {pipeline_mode = #tpu.pipeline_mode<synchronous>, transform_indices = @transform_1, window_bounds = array<i64: 256, 128>}, {pipeline_mode = #tpu.pipeline_mode<synchronous>, transform_indices = @transform_2, window_bounds = array<i64: 1, 128>}, {transform_indices = @transform_3, window_bounds = array<i64: 4, 128>}]} {
    %c0 = arith.constant 0 : index
    %c0_0 = arith.constant 0 : index
    %0 = vector.load %arg1[%c0, %c0_0] : memref<4x256xf32, #tpu.memory_space<vmem>>, vector<4x256xf32>
    %c0_1 = arith.constant 0 : index
    %c0_2 = arith.constant 0 : index
    %1 = vector.load %arg2[%c0_1, %c0_2] : memref<256x128xf32, #tpu.memory_space<vmem>>, vector<256x128xf32>
    %cst = arith.constant dense<0.000000e+00> : vector<4x128xf32>
    %2 = tpu.matmul %0, %1, %cst {dimension_numbers = #tpu.dot_dimension_numbers<[1], [0], [0], [1], [0, 0, 1, 1], [], []>} : vector<4x256xf32>, vector<256x128xf32>, vector<4x128xf32> -> vector<4x128xf32>
    %c0_3 = arith.constant 0 : index
    %c0_4 = arith.constant 0 : index
    %3 = vector.load %arg3[%c0_3, %c0_4] : memref<1x128xf32, #tpu.memory_space<vmem>>, vector<1x128xf32>
    %4 = vector.broadcast %3 : vector<1x128xf32> to vector<4x128xf32>
    %5 = arith.addf %2, %4 : vector<4x128xf32>
    %c0_5 = arith.constant 0 : index
    %c0_6 = arith.constant 0 : index
    %6 = vector.load %arg4[%c0_5, %c0_6] : memref<4x128xf32, #tpu.memory_space<vmem>>, vector<4x128xf32>
    tpu.vector_store %arg4[%c0_5, %c0_6], %5 {strides = array<i32>} : memref<4x128xf32, #tpu.memory_space<vmem>>, vector<4x128xf32>,
    return
  }
  func.func @transform_0(%arg0: i32) -> (i32, i32) {
    %c0_i32 = arith.constant 0 : i32
    %c0_i32_0 = arith.constant 0 : i32
    return %arg0, %c0_i32 : i32, i32
  }
  func.func @transform_1(%arg0: i32) -> (i32, i32) {
    %c0_i32 = arith.constant 0 : i32
    %c0_i32_0 = arith.constant 0 : i32
    %c0_i32_1 = arith.constant 0 : i32
    return %c0_i32, %c0_i32_0 : i32, i32
  }
  func.func @transform_2(%arg0: i32) -> (i32, i32) {
    %c0_i32 = arith.constant 0 : i32
    %c0_i32_0 = arith.constant 0 : i32
    %c0_i32_1 = arith.constant 0 : i32
    return %c0_i32, %c0_i32_0 : i32, i32
  }
  func.func @transform_3(%arg0: i32) -> (i32, i32) {
    %c0_i32 = arith.constant 0 : i32
    %c0_i32_0 = arith.constant 0 : i32
    return %arg0, %c0_i32 : i32, i32
  }
}

</mosaic_0001>

<bundles_post_ra>
// kernel: tpu_custom_call.1
= control target key start
LH: loop header
LB: loop body
LE: loop exit
PB: predicated region body
PF: predicated region fallthrough
CT: control target
= control target key end

     0   :  { %8 = vsyncpa [#allocation3], 0  ;;  %s388_s0 = inlined_call_operand.hbm [shape: f32[4,256], index: 0, kind: input, shape index: {}]   ;;  %s389_s1 = inlined_call_operand.hbm [shape: f32[256,128], index: 1, kind: input, shape index: {}]   ;;  %s390_s2 = inlined_call_operand.vmem [shape: f32[1,128], index: 2, kind: input, shape index: {}]   ;;  %s391_s3 = inlined_call_operand.hbm [shape: f32[4,128], index: 3, kind: output, shape index: {}]  }
   0x1   :  { %9 = vsyncpa [#allocation6], 0 }
   0x2   :  { %10 = vsyncpa [#allocation4], 0  ;;  %s317_s12 = smov [#allocation2]   ;;  %s318_s14 = smov [#allocation5]  }
   0x3   :  { %s17_s13 = sshll.u32 %s317_s12, 4  ;;  %s26_s15 = sshll.u32 %s318_s14, 4  ;;  %s18_s13 = int_to_ptr.vmem [resolvable:$true] %s17_s13  ;;  %s342_s15 = int_to_ptr.vmem [resolvable:$true] %s26_s15 }
   0x4   :  { %s245_s18 = scalar_lea.hbm %s388_s0, 128 }
   0x5   :  { %p246_p0 = scmp.ne.s32.totalorder %s388_s0, %s245_s18  ;;  %p249_p1 = scmp.lt.u32.totalorder %s245_s18, %s388_s0 }
   0x7   :  { %p251_p2 = pnand %p249_p1, %p246_p0 }
   0x9   :  { %254 = shalt.err (!%p251_p2)
}
   0xa   :  { %s255_s23 = scalar_lea.vmem %s18_s13, 128  ;;  %p260_p4 = scmp.lt.s32.totalorder %s18_s13, %s18_s13 }
   0xb   :  { %p256_p3 = scmp.ne.s32.totalorder %s18_s13, %s255_s23  ;;  %p261_p5 = scmp.lt.s32.totalorder %s255_s23, %s255_s23 }
   0xd   :  { %p262_p6 = por %p261_p5, %p260_p4 }
   0xf   :  { %p263_p7 = pnand %p262_p6, %p256_p3 }
  0x11   :  { %266 = shalt.err (!%p263_p7)
}
  0x12   :  { %20 = dma.hbm_to_vmem [thread:$0]  %s388_s0, 128, %s18_s13, [#allocation3]  }
  0x13   :  { %s267_s28 = scalar_lea.hbm %s389_s1, 4096 }
  0x14   :  { %p268_p8 = scmp.ne.s32.totalorder %s389_s1, %s267_s28  ;;  %p271_p9 = scmp.lt.u32.totalorder %s267_s28, %s389_s1 }
  0x16   :  { %p273_p10 = pnand %p271_p9, %p268_p8 }
  0x18   :  { %276 = shalt.err (!%p273_p10)
}
  0x19   :  { %s277_s6 = scalar_lea.vmem %s342_s15, 4096  ;;  %p282_p12 = scmp.lt.s32.totalorder %s342_s15, %s342_s15 }
  0x1a   :  { %p278_p11 = scmp.ne.s32.totalorder %s342_s15, %s277_s6  ;;  %p283_p13 = scmp.lt.s32.totalorder %s277_s6, %s277_s6 }
  0x1c   :  { %p284_p0 = por %p283_p13, %p282_p12 }
  0x1e   :  { %p285_p1 = pnand %p284_p0, %p278_p11 }
  0x20   :  { %288 = shalt.err (!%p285_p1)
}
  0x21   :  { %s319_s0 = smov 128   ;;  %s320_s7 = smov 8  }
  0x22   :  { %32 = dma.hbm_to_vmem [thread:$0]  %s389_s1, 4096, %s342_s15, [#allocation6], %s319_s0, %s319_s0, %s320_s7  }
  0x23   :  { %311 = dma.done.wait [#allocation3], 128  }
  0x24   :  { %312 = vsyncadd [#allocation3], 4294967168 }
  0x25   :  { %313 = dma.done.wait [#allocation6], 4096  }
  0x26   :  { %314 = vsyncadd [#allocation6], 4294963200  ;;  %v58_v0 = vld [vmem:[#allocation5 + $0x80] sm:$0xff]  ;;  %v59_v1 = vld [vmem:[#allocation5 + $0x88] sm:$0xff]  ;;  %s321_s11 = smov [#allocation7]  }
  0x27   :  { %v42_v2 = vld [vmem:[#allocation5] sm:$0xff]  ;;  %v207_v3 = vpack.c.bf16 %v59_v1, %v58_v0  ;;  %v43_v4 = vld [vmem:[#allocation5 + $0x8] sm:$0xff]  ;;  %v60_v5 = vld [vmem:[#allocation5 + $0x90] sm:$0xff]  ;;  %s161_s12 = sshll.u32 %s321_s11, 4  ;;  %s162_s12 = int_to_ptr.vmem [resolvable:$true] %s161_s12 }
  0x28   :  { %v61_v6 = vld [vmem:[#allocation5 + $0x98] sm:$0xff]  ;;  %v209_v7 = vpack.c.bf16 %v43_v4, %v42_v2  ;;  %v44_v9 = vld [vmem:[#allocation5 + $0x10] sm:$0xff]  ;;  %v62_v11 = vld [vmem:[#allocation5 + $0xa0] sm:$0xff]  ;;  %s289_s13 = scalar_lea.vmem %s162_s12, 64  ;;  %p294_p3 = scmp.lt.s32.totalorder %s162_s12, %s162_s12 }
  0x29   :  { %v211_v8 = vpack.c.bf16 %v61_v6, %v60_v5  ;;  %v45_v10 = vld [vmem:[#allocation5 + $0x18] sm:$0xff]  ;;  %208 = vmatprep.subr.bf16.mxu0 %v207_v3  ;;  %v63_v12 = vld [vmem:[#allocation5 + $0xa8] sm:$0xff]  ;;  %v46_v15 = vld [vmem:[#allocation5 + $0x20] sm:$0xff]  ;;  %p290_p2 = scmp.ne.s32.totalorder %s162_s12, %s289_s13  ;;  %p295_p4 = scmp.lt.s32.totalorder %s289_s13, %s289_s13 }
  0x2a   :  { %210 = vmatpush3.bf16.msra.mxu0 %v209_v7  ;;  %v213_v13 = vpack.c.bf16 %v45_v10, %v44_v9  ;;  %v215_v14 = vpack.c.bf16 %v63_v12, %v62_v11  ;;  %v47_v16 = vld [vmem:[#allocation5 + $0x28] sm:$0xff]  ;;  %v64_v17 = vld [vmem:[#allocation5 + $0xb0] sm:$0xff]  ;;  %v65_v18 = vld [vmem:[#allocation5 + $0xb8] sm:$0xff] }
  0x2b   :  { %212 = vmatprep.subr.bf16.mxu0 %v211_v8  ;;  %v217_v19 = vpack.c.bf16 %v47_v16, %v46_v15  ;;  %v219_v20 = vpack.c.bf16 %v65_v18, %v64_v17  ;;  %v48_v21 = vld [vmem:[#allocation5 + $0x30] sm:$0xff]  ;;  %v49_v22 = vld [vmem:[#allocation5 + $0x38] sm:$0xff]  ;;  %v66_v23 = vld [vmem:[#allocation5 + $0xc0] sm:$0xff]  ;;  %p296_p5 = por %p295_p4, %p294_p3 }
  0x2c   :  { %v67_v24 = vld [vmem:[#allocation5 + $0xc8] sm:$0xff]  ;;  %v41_v25 = vld [vmem:[#allocation2] sm:$0xff]  ;;  %v221_v27 = vpack.c.bf16 %v49_v22, %v48_v21  ;;  %v50_v29 = vld [vmem:[#allocation5 + $0x40] sm:$0xff] }
  0x2d   :  { %v82_v26 = vcombine.high %v41_v25, %v41_v25  ;;  %v223_v28 = vpack.c.bf16 %v67_v24, %v66_v23  ;;  %v51_v30 = vld [vmem:[#allocation5 + $0x48] sm:$0xff]  ;;  %v68_v31 = vld [vmem:[#allocation5 + $0xd0] sm:$0xff]  ;;  %v69_v32 = vld [vmem:[#allocation5 + $0xd8] sm:$0xff]  ;;  %p297_p6 = pnand %p296_p5, %p290_p2 }
  0x2e   :  { %214 = vmatpush3.bf16.msra.mxu0 %v213_v13  ;;  %v225_v33 = vpack.c.bf16 %v51_v30, %v50_v29  ;;  %v227_v34 = vpack.c.bf16 %v69_v32, %v68_v31  ;;  %v52_v35 = vld [vmem:[#allocation5 + $0x50] sm:$0xff]  ;;  %v53_v36 = vld [vmem:[#allocation5 + $0x58] sm:$0xff]  ;;  %v70_v37 = vld [vmem:[#allocation5 + $0xe0] sm:$0xff] }
  0x2f   :  { %216 = vmatprep.subr.bf16.mxu0 %v215_v14  ;;  %148 = vmatprep.mubr.f32.mxu0 %v82_v26  ;;  %v71_v38 = vld [vmem:[#allocation5 + $0xe8] sm:$0xff]  ;;  %v229_v39 = vpack.c.bf16 %v53_v36, %v52_v35  ;;  %v54_v41 = vld [vmem:[#allocation5 + $0x60] sm:$0xff]  ;;  %v72_v43 = vld [vmem:[#allocation5 + $0xf0] sm:$0xff] }
  0x30   :  { %v231_v40 = vpack.c.bf16 %v71_v38, %v70_v37  ;;  %v55_v42 = vld [vmem:[#allocation5 + $0x68] sm:$0xff]  ;;  %v73_v44 = vld [vmem:[#allocation5 + $0xf8] sm:$0xff]  ;;  %v56_v47 = vld [vmem:[#allocation5 + $0x70] sm:$0xff] }
  0x31   :  { %v233_v45 = vpack.c.bf16 %v55_v42, %v54_v41  ;;  %v235_v46 = vpack.c.bf16 %v73_v44, %v72_v43  ;;  %v57_v48 = vld [vmem:[#allocation5 + $0x78] sm:$0xff] }
  0x32   :  { %218 = vmatpush3.bf16.msra.mxu0 %v217_v19  ;;  %v237_v49 = vpack.c.bf16 %v57_v48, %v56_v47  ;;  %v171_v51 = vld [vmem:[%s390_s2] ss:$0 sm:$0xff] }
  0x33   :  { %220 = vmatprep.subr.bf16.mxu0 %v219_v20 }
  0x36   :  { %222 = vmatpush3.bf16.msra.mxu0 %v221_v27 }
  0x37   :  { %224 = vmatprep.subr.bf16.mxu0 %v223_v28 }
  0x3a   :  { %226 = vmatpush3.bf16.msra.mxu0 %v225_v33 }
  0x3b   :  { %228 = vmatprep.subr.bf16.mxu0 %v227_v34 }
  0x3e   :  { %230 = vmatpush3.bf16.msra.mxu0 %v229_v39 }
  0x3f   :  { %232 = vmatprep.subr.bf16.mxu0 %v231_v40 }
  0x42   :  { %234 = vmatpush3.bf16.msra.mxu0 %v233_v45 }
  0x43   :  { %236 = vmatprep.subr.bf16.mxu0 %v235_v46 }
  0x46   :  { %238 = vmatpush3.bf16.msra.mxu0 %v237_v49 }
  0x49   :  { %149 = vmatmul.mubr.f32.vlgmr.msra.gmra.mrb[0].mxu0 %v41_v25 }
 0x11c   :  { %v204_v50 = vpop.f32.mrb[0].mxu0 }
 0x11d   :  { %v205_v52 = vpop.f32.mrb[1].mxu0 }
 0x11e   :  { %v206_v53 = vadd.f32 %v205_v52, %v204_v50 }
 0x120   :  { %v151_v54 = vadd.f32 %v206_v53, %v171_v51 }
 0x122   :  { %154 = vst [vmem:[#allocation7] sm:$0xf] %v151_v54 }
 0x123   :  { %300 = shalt.err (!%p297_p6)
}
 0x124   :  { %s301_s16 = scalar_lea.hbm %s391_s3, 64 }
 0x125   :  { %p302_p7 = scmp.ne.s32.totalorder %s391_s3, %s301_s16  ;;  %p305_p8 = scmp.lt.u32.totalorder %s301_s16, %s391_s3 }
 0x127   :  { %p307_p9 = pnand %p305_p8, %p302_p7 }
 0x129   :  { %310 = shalt.err (!%p307_p9)
}
 0x12a   :  { %164 = dma.vmem_to_hbm [thread:$0]  %s162_s12, 64, %s391_s3, [#allocation4]  }
 0x12b   :  { %315 = dma.done.wait [#allocation4], 64  }
 0x12c   :  { %316 = vsyncadd [#allocation4], 4294967232 }
 0x12d   :  { %168 = vsyncpa [#allocation3], 1 }
 0x12e   :  { %169 = vsyncpa [#allocation6], 1 }
 0x12f   :  { %170 = vsyncpa [#allocation4], 1 }

</bundles_post_ra>
